<compile_context>
chip_gen: v7x
topology: tpu7x:2x2x1
jax: 0.10.0
libtpu: 0.0.40
codegen_flags: <defaults>
</compile_context>

<pallas_src>
import jax
import jax.numpy as jnp
from jax import lax
from jax.experimental import pallas as pl
from jax.experimental.pallas import tpu as pltpu

_LANES = 128
_NEG_INF = float("-inf")


def _round_up(x: int, m: int) -> int:
    return ((x + m - 1) // m) * m


def _tpu_vmem_capacity_bytes() -> int:
    """Best-effort per-core VMEM capacity; conservative (v7x, 64 MiB) fallback."""
    try:
        get_info = getattr(pltpu, "get_tpu_info", None)
        if get_info is not None:
            cap = int(getattr(get_info(), "vmem_capacity_bytes", 0))
            if cap > 0:
                return cap
    except Exception:
        pass
    return 64 * 1024 * 1024


def _pick_block_k(K: int) -> int:
    """Lane-dense class tile; prefer a 128-multiple that divides K exactly so
    the masked last-tile path is never generated (e.g. 1280 for K=32000)."""
    hi = min(_round_up(K, _LANES), 2048)
    for cand in range(hi, 511, -_LANES):
        if K % cand == 0:
            return cand
    return hi


def _make_kernel(B: int, K: int, TB: int, TK: int, nk: int):
    C = TK // _LANES                                   # 128-wide chunks per full tile
    rem = K - (nk - 1) * TK                            # valid columns in the last tile
    last_chunks = -(-rem // _LANES)                    # chunks carrying any valid data
    partial_cols = rem - (last_chunks - 1) * _LANES    # valid cols in straddling chunk
    has_partial = partial_cols != _LANES
    row_mask_needed = (B % TB) != 0

    def kernel(x_ref, t_ref, out_ref, m_scr, l_scr, tsum_scr, txsum_scr):
        # All program_id reads are hoisted to the top level; calling them inside
        # a pl.when body breaks the interpret fallback (no CPU lowering rule).
        k_id = pl.program_id(1)
        i_id = pl.program_id(0) if row_mask_needed else None

        @pl.when(k_id == 0)
        def _init():
            m_scr[...] = jnp.full(m_scr.shape, _NEG_INF, m_scr.dtype)
            l_scr[...] = jnp.zeros(l_scr.shape, l_scr.dtype)
            tsum_scr[...] = jnp.zeros(tsum_scr.shape, tsum_scr.dtype)
            txsum_scr[...] = jnp.zeros(txsum_scr.shape, txsum_scr.dtype)

        def chunk(ref, c):
            return ref[:, c * _LANES:(c + 1) * _LANES]

        def update(n_chunks, masked):
            valid = None
            if masked:
                valid = (lax.broadcasted_iota(jnp.int32, (TB, _LANES), 1)
                         < partial_cols)

            m_prev = m_scr[...]

            # Pass 1: lane-wise max of this tile's valid chunks (native dtype;
            # max is exact, upcast once at the end). Purely elementwise.
            m_tile = None
            for c in range(n_chunks):
                xc = chunk(x_ref, c)
                if masked and c == n_chunks - 1:
                    xc = jnp.where(valid, xc, _NEG_INF)
                m_tile = xc if m_tile is None else jnp.maximum(m_tile, xc)
            m_new = jnp.maximum(m_prev, m_tile.astype(jnp.float32))
            # Guard against (-inf) - (-inf) = nan for lanes that only saw -inf.
            m_sub = jnp.where(m_new == _NEG_INF, 0.0, m_new)

            alpha = jnp.exp(m_prev - m_sub)
            l_acc = alpha * l_scr[...]
            t_acc = tsum_scr[...]
            tx_acc = txsum_scr[...]

            # Pass 2: elementwise exp-sum and the two plain running sums.
            for c in range(n_chunks):
                xc = chunk(x_ref, c).astype(jnp.float32)
                tc = chunk(t_ref, c).astype(jnp.float32)
                if masked and c == n_chunks - 1:
                    xm = jnp.where(valid, xc, _NEG_INF)
                    e = jnp.exp(xm - m_sub)
                    tc = jnp.where(valid, tc, 0.0)
                    tx = jnp.where(valid, tc * xc, 0.0)
                else:
                    e = jnp.exp(xc - m_sub)
                    tx = tc * xc
                l_acc = l_acc + e
                t_acc = t_acc + tc
                tx_acc = tx_acc + tx

            m_scr[...] = m_new
            l_scr[...] = l_acc
            tsum_scr[...] = t_acc
            txsum_scr[...] = tx_acc

        if nk > 1:
            # Interior class tiles: always full width, zero masking cost.
            @pl.when(k_id != nk - 1)
            def _interior():
                update(C, False)

        @pl.when(k_id == nk - 1)
        def _last():
            update(last_chunks, has_partial)

            # Finalize: single cross-lane merge of the 128 per-lane statistics.
            m_lane = m_scr[...]
            m_row = jnp.max(m_lane, axis=1, keepdims=True)
            m_row_sub = jnp.where(m_row == _NEG_INF, 0.0, m_row)
            scale = jnp.exp(m_lane - m_row_sub)
            l_row = jnp.sum(l_scr[...] * scale, axis=1, keepdims=True)
            lse = m_row + jnp.log(l_row)
            t_row = jnp.sum(tsum_scr[...], axis=1, keepdims=True)
            tx_row = jnp.sum(txsum_scr[...], axis=1, keepdims=True)
            loss_row = lse * t_row - tx_row                       # (TB, 1)
            if row_mask_needed:
                row = i_id * TB + lax.broadcasted_iota(jnp.int32, (TB, 1), 0)
                loss_row = jnp.where(row < B, loss_row, 0.0)
            out_ref[...] = loss_row

    return kernel


def cross_entropy_distill(
    inputs: jax.Array,
    targets: jax.Array,
    *,
    block_b: int | None = None,
    block_k: int | None = None,
) -> jax.Array:
    """Pallas implementation of CrossEntropyDistill.forward.

    Args:
      inputs:  (batch, num_classes) pre-softmax logits (any float dtype).
      targets: (batch, num_classes) soft labels (any float dtype).
    Returns:
      scalar float32 loss.
    """
    assert inputs.ndim == 2 and inputs.shape == targets.shape
    B, K = inputs.shape
    pair_bytes = inputs.dtype.itemsize + targets.dtype.itemsize

    vmem_cap = _tpu_vmem_capacity_bytes()
    big_vmem = vmem_cap >= 96 * 1024 * 1024   # v5e/v6e (128 MiB) vs v7x (64 MiB)

    if block_k is None:
        block_k = _pick_block_k(K)
    if block_b is None:
        # Double-buffered input tiles must fit the generation's VMEM budget.
        budget_bytes = (48 if big_vmem else 22) * 1024 * 1024
        max_tb = max(8, (budget_bytes // (2 * pair_bytes * block_k)) // 8 * 8)
        # Keep >= 2 batch blocks so both TensorCores of a v7x megacore get work.
        two_core_cap = max(8, _round_up(-(-B // 2), 8))
        hard_cap = 1024 if big_vmem else 512
        block_b = min(_round_up(B, 8), max_tb, hard_cap, two_core_cap)
    assert block_b % 8 == 0 and block_k % _LANES == 0

    nb = pl.cdiv(B, block_b)
    nk = pl.cdiv(K, block_k)
    kernel = _make_kernel(B, K, block_b, block_k, nk)

    # Actual VMEM footprint: double-buffered input tiles + lane-wide scratch + out.
    footprint = 2 * block_b * block_k * pair_bytes
    footprint += 4 * block_b * _LANES * 4 + 2 * block_b * 4
    vmem_limit = int(min(max(footprint + (16 << 20), 32 << 20),
                         int(vmem_cap * 0.9)))

    cost = pl.CostEstimate(
        flops=8 * B * K,
        transcendentals=B * K,
        bytes_accessed=B * K * pair_bytes + nb * block_b * 4,
    )

    partials = pl.pallas_call(
        kernel,
        out_shape=jax.ShapeDtypeStruct((nb * block_b, 1), jnp.float32),
        grid_spec=pltpu.PrefetchScalarGridSpec(
            num_scalar_prefetch=0,
            grid=(nb, nk),  # reduction (class) axis last
            in_specs=[
                pl.BlockSpec((block_b, block_k), lambda i, k: (i, k)),
                pl.BlockSpec((block_b, block_k), lambda i, k: (i, k)),
            ],
            out_specs=pl.BlockSpec((block_b, 1), lambda i, k: (i, 0)),
            scratch_shapes=[pltpu.VMEM((block_b, _LANES), jnp.float32)] * 4,
        ),
        compiler_params=pltpu.CompilerParams(
            dimension_semantics=("parallel", "arbitrary"),
            vmem_limit_bytes=vmem_limit,
        ),
        cost_estimate=cost,
    )(inputs, targets)

    # Tiny cross-tile reduction + mean(0) normalization done in the wrapper.
    return jnp.sum(partials) / jnp.float32(B)


def _reference(inputs, targets):
    logp = jax.nn.log_softmax(inputs.astype(jnp.float32), axis=1)
    return jnp.sum(jnp.mean(-targets.astype(jnp.float32) * logp, axis=0))


if __name__ == "__main__":
    key = jax.random.PRNGKey(0)
    k1, k2 = jax.random.split(key)

    # Small but non-trivial: partial class tile (1000 % 128 != 0) and partial
    # batch tile (12 % 8 != 0) once tiles are small.
    batch, num_classes = 12, 1000
    inputs = jax.random.normal(k1, (batch, num_classes), dtype=jnp.float32)
    targets = jax.nn.softmax(
        jax.random.normal(k2, (batch, num_classes), dtype=jnp.float32), axis=1
    )
    ref = _reference(inputs, targets)

    # 1) Auto-sized tiles: single masked class tile, >=2 batch tiles.
    loss = cross_entropy_distill(inputs, targets)
    jax.block_until_ready(loss)
    assert jnp.allclose(loss, ref, rtol=1e-5, atol=1e-5), (loss, ref)

    # 2) Forced small tiles: multi-tile online logsumexp, unmasked interior
    #    tiles + masked last tile + row masking.
    loss_tiled = cross_entropy_distill(inputs, targets, block_b=8, block_k=128)
    jax.block_until_ready(loss_tiled)
    assert jnp.allclose(loss_tiled, ref, rtol=1e-5, atol=1e-5), (loss_tiled, ref)

    # 3) bf16 logits streamed directly (no wrapper upcast; in-kernel f32 math).
    inputs_bf16 = inputs.astype(jnp.bfloat16)
    loss_bf16 = cross_entropy_distill(inputs_bf16, targets, block_b=8, block_k=128)
    jax.block_until_ready(loss_bf16)
    ref_bf16 = _reference(inputs_bf16, targets)
    assert jnp.allclose(loss_bf16, ref_bf16, rtol=2e-2, atol=2e-2), (
        loss_bf16, ref_bf16)

    # 4) bf16 logits AND bf16 soft labels (halves HBM bytes/elem; loss is
    #    linear in targets so the numeric impact is small).
    targets_bf16 = targets.astype(jnp.bfloat16)
    loss_bf16_t = cross_entropy_distill(inputs_bf16, targets_bf16)
    jax.block_until_ready(loss_bf16_t)
    ref_bf16_t = _reference(inputs_bf16, targets_bf16)
    assert jnp.allclose(loss_bf16_t, ref_bf16_t, rtol=2e-2, atol=2e-2), (
        loss_bf16_t, ref_bf16_t)

    print("KERNEL_OK")
</pallas_src>

<mosaic_0001>
module attributes {stable_mosaic.version = 11 : i64} {
  func.func @kernel(%arg0: i32, %arg1: i32, %arg2: memref<8x1024xf32, #tpu.memory_space<vmem>>, %arg3: memref<8x1024xf32, #tpu.memory_space<vmem>>, %arg4: memref<8x1xf32, #tpu.memory_space<vmem>>, %arg5: memref<8x128xf32, #tpu.memory_space<vmem>>, %arg6: memref<8x128xf32, #tpu.memory_space<vmem>>, %arg7: memref<8x128xf32, #tpu.memory_space<vmem>>, %arg8: memref<8x128xf32, #tpu.memory_space<vmem>>) attributes {dimension_semantics = [#tpu.dimension_semantics<parallel>, #tpu.dimension_semantics<arbitrary>], iteration_bounds = array<i64: 2, 1>, scalar_prefetch = 0 : i64, scratch_operands = 4 : i64, tpu.core_type = #tpu.core_type<tc>, window_params = [{transform_indices = @transform_0, window_bounds = array<i64: 8, 1024>}, {transform_indices = @transform_1, window_bounds = array<i64: 8, 1024>}, {transform_indices = @transform_2, window_bounds = array<i64: 8, 1>}]} {
    %c0_i32 = arith.constant 0 : i32
    %0 = arith.cmpi eq, %arg1, %c0_i32 : i32
    %1 = arith.extui %0 : i1 to i32
    %c0_i32_0 = arith.constant 0 : i32
    %2 = arith.cmpi ne, %1, %c0_i32_0 : i32
    scf.if %2 {
      %cst = arith.constant 0xFF800000 : f32
      %6 = vector.broadcast %cst : f32 to vector<8x128xf32>
      %c0 = arith.constant 0 : index
      %c0_3 = arith.constant 0 : index
      %7 = vector.load %arg5[%c0, %c0_3] : memref<8x128xf32, #tpu.memory_space<vmem>>, vector<8x128xf32>
      tpu.vector_store %arg5[%c0, %c0_3], %6 {strides = array<i32>} : memref<8x128xf32, #tpu.memory_space<vmem>>, vector<8x128xf32>,
      %cst_4 = arith.constant 0.000000e+00 : f32
      %8 = vector.broadcast %cst_4 : f32 to vector<8x128xf32>
      %c0_5 = arith.constant 0 : index
      %c0_6 = arith.constant 0 : index
      %9 = vector.load %arg6[%c0_5, %c0_6] : memref<8x128xf32, #tpu.memory_space<vmem>>, vector<8x128xf32>
      tpu.vector_store %arg6[%c0_5, %c0_6], %8 {strides = array<i32>} : memref<8x128xf32, #tpu.memory_space<vmem>>, vector<8x128xf32>,
      %cst_7 = arith.constant 0.000000e+00 : f32
      %10 = vector.broadcast %cst_7 : f32 to vector<8x128xf32>
      %c0_8 = arith.constant 0 : index
      %c0_9 = arith.constant 0 : index
      %11 = vector.load %arg7[%c0_8, %c0_9] : memref<8x128xf32, #tpu.memory_space<vmem>>, vector<8x128xf32>
      tpu.vector_store %arg7[%c0_8, %c0_9], %10 {strides = array<i32>} : memref<8x128xf32, #tpu.memory_space<vmem>>, vector<8x128xf32>,
      %cst_10 = arith.constant 0.000000e+00 : f32
      %12 = vector.broadcast %cst_10 : f32 to vector<8x128xf32>
      %c0_11 = arith.constant 0 : index
      %c0_12 = arith.constant 0 : index
      %13 = vector.load %arg8[%c0_11, %c0_12] : memref<8x128xf32, #tpu.memory_space<vmem>>, vector<8x128xf32>
      tpu.vector_store %arg8[%c0_11, %c0_12], %12 {strides = array<i32>} : memref<8x128xf32, #tpu.memory_space<vmem>>, vector<8x128xf32>,
    } else {
    }
    %c0_i32_1 = arith.constant 0 : i32
    %3 = arith.cmpi eq, %arg1, %c0_i32_1 : i32
    %4 = arith.extui %3 : i1 to i32
    %c0_i32_2 = arith.constant 0 : i32
    %5 = arith.cmpi ne, %4, %c0_i32_2 : i32
    scf.if %5 {
      %6 = tpu.iota {dimensions = array<i32: 1>} : vector<8x128xi32>
      %c104_i32 = arith.constant 104 : i32
      %7 = vector.broadcast %c104_i32 : i32 to vector<8x128xi32>
      %8 = arith.cmpi slt, %6, %7 : vector<8x128xi32>
      %c0 = arith.constant 0 : index
      %c0_3 = arith.constant 0 : index
      %9 = vector.load %arg5[%c0, %c0_3] : memref<8x128xf32, #tpu.memory_space<vmem>>, vector<8x128xf32>
      %c0_4 = arith.constant 0 : index
      %c0_5 = arith.constant 0 : index
      %10 = vector.load %arg2[%c0_4, %c0_5] : memref<8x1024xf32, #tpu.memory_space<vmem>>, vector<8x128xf32>
      %c0_6 = arith.constant 0 : index
      %c128 = arith.constant 128 : index
      %11 = vector.load %arg2[%c0_6, %c128] : memref<8x1024xf32, #tpu.memory_space<vmem>>, vector<8x128xf32>
      %12 = arith.maximumf %10, %11 : vector<8x128xf32>
      %c0_7 = arith.constant 0 : index
      %c256 = arith.constant 256 : index
      %13 = vector.load %arg2[%c0_7, %c256] : memref<8x1024xf32, #tpu.memory_space<vmem>>, vector<8x128xf32>
      %14 = arith.maximumf %12, %13 : vector<8x128xf32>
      %c0_8 = arith.constant 0 : index
      %c384 = arith.constant 384 : index
      %15 = vector.load %arg2[%c0_8, %c384] : memref<8x1024xf32, #tpu.memory_space<vmem>>, vector<8x128xf32>
      %16 = arith.maximumf %14, %15 : vector<8x128xf32>
      %c0_9 = arith.constant 0 : index
      %c512 = arith.constant 512 : index
      %17 = vector.load %arg2[%c0_9, %c512] : memref<8x1024xf32, #tpu.memory_space<vmem>>, vector<8x128xf32>
      %18 = arith.maximumf %16, %17 : vector<8x128xf32>
      %c0_10 = arith.constant 0 : index
      %c640 = arith.constant 640 : index
      %19 = vector.load %arg2[%c0_10, %c640] : memref<8x1024xf32, #tpu.memory_space<vmem>>, vector<8x128xf32>
      %20 = arith.maximumf %18, %19 : vector<8x128xf32>
      %c0_11 = arith.constant 0 : index
      %c768 = arith.constant 768 : index
      %21 = vector.load %arg2[%c0_11, %c768] : memref<8x1024xf32, #tpu.memory_space<vmem>>, vector<8x128xf32>
      %22 = arith.maximumf %20, %21 : vector<8x128xf32>
      %c0_12 = arith.constant 0 : index
      %c896 = arith.constant 896 : index
      %23 = vector.load %arg2[%c0_12, %c896] : memref<8x1024xf32, #tpu.memory_space<vmem>>, vector<8x128xf32>
      %cst = arith.constant 0xFF800000 : f32
      %24 = vector.broadcast %cst : f32 to vector<8x128xf32>
      %25 = arith.select %8, %23, %24 : vector<8x128xi1>, vector<8x128xf32>
      %26 = arith.maximumf %22, %25 : vector<8x128xf32>
      %27 = arith.maximumf %9, %26 : vector<8x128xf32>
      %cst_13 = arith.constant 0xFF800000 : f32
      %28 = vector.broadcast %cst_13 : f32 to vector<8x128xf32>
      %29 = arith.cmpf oeq, %27, %28 : vector<8x128xf32>
      %cst_14 = arith.constant 0.000000e+00 : f32
      %30 = vector.broadcast %cst_14 : f32 to vector<8x128xf32>
      %31 = arith.select %29, %30, %27 : vector<8x128xi1>, vector<8x128xf32>
      %32 = arith.subf %9, %31 : vector<8x128xf32>
      %33 = math.exp %32 : vector<8x128xf32>
      %c0_15 = arith.constant 0 : index
      %c0_16 = arith.constant 0 : index
      %34 = vector.load %arg6[%c0_15, %c0_16] : memref<8x128xf32, #tpu.memory_space<vmem>>, vector<8x128xf32>
      %35 = arith.mulf %33, %34 : vector<8x128xf32>
      %c0_17 = arith.constant 0 : index
      %c0_18 = arith.constant 0 : index
      %36 = vector.load %arg7[%c0_17, %c0_18] : memref<8x128xf32, #tpu.memory_space<vmem>>, vector<8x128xf32>
      %c0_19 = arith.constant 0 : index
      %c0_20 = arith.constant 0 : index
      %37 = vector.load %arg8[%c0_19, %c0_20] : memref<8x128xf32, #tpu.memory_space<vmem>>, vector<8x128xf32>
      %c0_21 = arith.constant 0 : index
      %c0_22 = arith.constant 0 : index
      %38 = vector.load %arg2[%c0_21, %c0_22] : memref<8x1024xf32, #tpu.memory_space<vmem>>, vector<8x128xf32>
      %c0_23 = arith.constant 0 : index
      %c0_24 = arith.constant 0 : index
      %39 = vector.load %arg3[%c0_23, %c0_24] : memref<8x1024xf32, #tpu.memory_space<vmem>>, vector<8x128xf32>
      %40 = arith.subf %38, %31 : vector<8x128xf32>
      %41 = math.exp %40 : vector<8x128xf32>
      %42 = arith.mulf %39, %38 : vector<8x128xf32>
      %43 = arith.addf %35, %41 : vector<8x128xf32>
      %44 = arith.addf %36, %39 : vector<8x128xf32>
      %45 = arith.addf %37, %42 : vector<8x128xf32>
      %c0_25 = arith.constant 0 : index
      %c128_26 = arith.constant 128 : index
      %46 = vector.load %arg2[%c0_25, %c128_26] : memref<8x1024xf32, #tpu.memory_space<vmem>>, vector<8x128xf32>
      %c0_27 = arith.constant 0 : index
      %c128_28 = arith.constant 128 : index
      %47 = vector.load %arg3[%c0_27, %c128_28] : memref<8x1024xf32, #tpu.memory_space<vmem>>, vector<8x128xf32>
      %48 = arith.subf %46, %31 : vector<8x128xf32>
      %49 = math.exp %48 : vector<8x128xf32>
      %50 = arith.mulf %47, %46 : vector<8x128xf32>
      %51 = arith.addf %43, %49 : vector<8x128xf32>
      %52 = arith.addf %44, %47 : vector<8x128xf32>
      %53 = arith.addf %45, %50 : vector<8x128xf32>
      %c0_29 = arith.constant 0 : index
      %c256_30 = arith.constant 256 : index
      %54 = vector.load %arg2[%c0_29, %c256_30] : memref<8x1024xf32, #tpu.memory_space<vmem>>, vector<8x128xf32>
      %c0_31 = arith.constant 0 : index
      %c256_32 = arith.constant 256 : index
      %55 = vector.load %arg3[%c0_31, %c256_32] : memref<8x1024xf32, #tpu.memory_space<vmem>>, vector<8x128xf32>
      %56 = arith.subf %54, %31 : vector<8x128xf32>
      %57 = math.exp %56 : vector<8x128xf32>
      %58 = arith.mulf %55, %54 : vector<8x128xf32>
      %59 = arith.addf %51, %57 : vector<8x128xf32>
      %60 = arith.addf %52, %55 : vector<8x128xf32>
      %61 = arith.addf %53, %58 : vector<8x128xf32>
      %c0_33 = arith.constant 0 : index
      %c384_34 = arith.constant 384 : index
      %62 = vector.load %arg2[%c0_33, %c384_34] : memref<8x1024xf32, #tpu.memory_space<vmem>>, vector<8x128xf32>
      %c0_35 = arith.constant 0 : index
      %c384_36 = arith.constant 384 : index
      %63 = vector.load %arg3[%c0_35, %c384_36] : memref<8x1024xf32, #tpu.memory_space<vmem>>, vector<8x128xf32>
      %64 = arith.subf %62, %31 : vector<8x128xf32>
      %65 = math.exp %64 : vector<8x128xf32>
      %66 = arith.mulf %63, %62 : vector<8x128xf32>
      %67 = arith.addf %59, %65 : vector<8x128xf32>
      %68 = arith.addf %60, %63 : vector<8x128xf32>
      %69 = arith.addf %61, %66 : vector<8x128xf32>
      %c0_37 = arith.constant 0 : index
      %c512_38 = arith.constant 512 : index
      %70 = vector.load %arg2[%c0_37, %c512_38] : memref<8x1024xf32, #tpu.memory_space<vmem>>, vector<8x128xf32>
      %c0_39 = arith.constant 0 : index
      %c512_40 = arith.constant 512 : index
      %71 = vector.load %arg3[%c0_39, %c512_40] : memref<8x1024xf32, #tpu.memory_space<vmem>>, vector<8x128xf32>
      %72 = arith.subf %70, %31 : vector<8x128xf32>
      %73 = math.exp %72 : vector<8x128xf32>
      %74 = arith.mulf %71, %70 : vector<8x128xf32>
      %75 = arith.addf %67, %73 : vector<8x128xf32>
      %76 = arith.addf %68, %71 : vector<8x128xf32>
      %77 = arith.addf %69, %74 : vector<8x128xf32>
      %c0_41 = arith.constant 0 : index
      %c640_42 = arith.constant 640 : index
      %78 = vector.load %arg2[%c0_41, %c640_42] : memref<8x1024xf32, #tpu.memory_space<vmem>>, vector<8x128xf32>
      %c0_43 = arith.constant 0 : index
      %c640_44 = arith.constant 640 : index
      %79 = vector.load %arg3[%c0_43, %c640_44] : memref<8x1024xf32, #tpu.memory_space<vmem>>, vector<8x128xf32>
      %80 = arith.subf %78, %31 : vector<8x128xf32>
      %81 = math.exp %80 : vector<8x128xf32>
      %82 = arith.mulf %79, %78 : vector<8x128xf32>
      %83 = arith.addf %75, %81 : vector<8x128xf32>
      %84 = arith.addf %76, %79 : vector<8x128xf32>
      %85 = arith.addf %77, %82 : vector<8x128xf32>
      %c0_45 = arith.constant 0 : index
      %c768_46 = arith.constant 768 : index
      %86 = vector.load %arg2[%c0_45, %c768_46] : memref<8x1024xf32, #tpu.memory_space<vmem>>, vector<8x128xf32>
      %c0_47 = arith.constant 0 : index
      %c768_48 = arith.constant 768 : index
      %87 = vector.load %arg3[%c0_47, %c768_48] : memref<8x1024xf32, #tpu.memory_space<vmem>>, vector<8x128xf32>
      %88 = arith.subf %86, %31 : vector<8x128xf32>
      %89 = math.exp %88 : vector<8x128xf32>
      %90 = arith.mulf %87, %86 : vector<8x128xf32>
      %91 = arith.addf %83, %89 : vector<8x128xf32>
      %92 = arith.addf %84, %87 : vector<8x128xf32>
      %93 = arith.addf %85, %90 : vector<8x128xf32>
      %c0_49 = arith.constant 0 : index
      %c896_50 = arith.constant 896 : index
      %94 = vector.load %arg2[%c0_49, %c896_50] : memref<8x1024xf32, #tpu.memory_space<vmem>>, vector<8x128xf32>
      %c0_51 = arith.constant 0 : index
      %c896_52 = arith.constant 896 : index
      %95 = vector.load %arg3[%c0_51, %c896_52] : memref<8x1024xf32, #tpu.memory_space<vmem>>, vector<8x128xf32>
      %cst_53 = arith.constant 0xFF800000 : f32
      %96 = vector.broadcast %cst_53 : f32 to vector<8x128xf32>
      %97 = arith.select %8, %94, %96 : vector<8x128xi1>, vector<8x128xf32>
      %98 = arith.subf %97, %31 : vector<8x128xf32>
      %99 = math.exp %98 : vector<8x128xf32>
      %cst_54 = arith.constant 0.000000e+00 : f32
      %100 = vector.broadcast %cst_54 : f32 to vector<8x128xf32>
      %101 = arith.select %8, %95, %100 : vector<8x128xi1>, vector<8x128xf32>
      %102 = arith.mulf %101, %94 : vector<8x128xf32>
      %cst_55 = arith.constant 0.000000e+00 : f32
      %103 = vector.broadcast %cst_55 : f32 to vector<8x128xf32>
      %104 = arith.select %8, %102, %103 : vector<8x128xi1>, vector<8x128xf32>
      %105 = arith.addf %91, %99 : vector<8x128xf32>
      %106 = arith.addf %92, %101 : vector<8x128xf32>
      %107 = arith.addf %93, %104 : vector<8x128xf32>
      %c0_56 = arith.constant 0 : index
      %c0_57 = arith.constant 0 : index
      %108 = vector.load %arg5[%c0_56, %c0_57] : memref<8x128xf32, #tpu.memory_space<vmem>>, vector<8x128xf32>
      tpu.vector_store %arg5[%c0_56, %c0_57], %27 {strides = array<i32>} : memref<8x128xf32, #tpu.memory_space<vmem>>, vector<8x128xf32>,
      %c0_58 = arith.constant 0 : index
      %c0_59 = arith.constant 0 : index
      %109 = vector.load %arg6[%c0_58, %c0_59] : memref<8x128xf32, #tpu.memory_space<vmem>>, vector<8x128xf32>
      tpu.vector_store %arg6[%c0_58, %c0_59], %105 {strides = array<i32>} : memref<8x128xf32, #tpu.memory_space<vmem>>, vector<8x128xf32>,
      %c0_60 = arith.constant 0 : index
      %c0_61 = arith.constant 0 : index
      %110 = vector.load %arg7[%c0_60, %c0_61] : memref<8x128xf32, #tpu.memory_space<vmem>>, vector<8x128xf32>
      tpu.vector_store %arg7[%c0_60, %c0_61], %106 {strides = array<i32>} : memref<8x128xf32, #tpu.memory_space<vmem>>, vector<8x128xf32>,
      %c0_62 = arith.constant 0 : index
      %c0_63 = arith.constant 0 : index
      %111 = vector.load %arg8[%c0_62, %c0_63] : memref<8x128xf32, #tpu.memory_space<vmem>>, vector<8x128xf32>
      tpu.vector_store %arg8[%c0_62, %c0_63], %107 {strides = array<i32>} : memref<8x128xf32, #tpu.memory_space<vmem>>, vector<8x128xf32>,
      %c0_64 = arith.constant 0 : index
      %c0_65 = arith.constant 0 : index
      %112 = vector.load %arg5[%c0_64, %c0_65] : memref<8x128xf32, #tpu.memory_space<vmem>>, vector<8x128xf32>
      %cst_66 = arith.constant dense<0xFF800000> : vector<8xf32>
      %113 = vector.multi_reduction <maximumf>, %112, %cst_66 [1] : vector<8x128xf32> to vector<8xf32>
      %114 = vector.shape_cast %113 : vector<8xf32> to vector<8x1xf32>
      %cst_67 = arith.constant 0xFF800000 : f32
      %115 = vector.broadcast %cst_67 : f32 to vector<8x1xf32>
      %116 = arith.cmpf oeq, %114, %115 : vector<8x1xf32>
      %cst_68 = arith.constant 0.000000e+00 : f32
      %117 = vector.broadcast %cst_68 : f32 to vector<8x1xf32>
      %118 = arith.select %116, %117, %114 : vector<8x1xi1>, vector<8x1xf32>
      %119 = vector.broadcast %118 : vector<8x1xf32> to vector<8x128xf32>
      %120 = arith.subf %112, %119 : vector<8x128xf32>
      %121 = math.exp %120 : vector<8x128xf32>
      %c0_69 = arith.constant 0 : index
      %c0_70 = arith.constant 0 : index
      %122 = vector.load %arg6[%c0_69, %c0_70] : memref<8x128xf32, #tpu.memory_space<vmem>>, vector<8x128xf32>
      %123 = arith.mulf %122, %121 : vector<8x128xf32>
      %cst_71 = arith.constant dense<0.000000e+00> : vector<8xf32>
      %124 = vector.multi_reduction <add>, %123, %cst_71 [1] : vector<8x128xf32> to vector<8xf32>
      %125 = vector.shape_cast %124 : vector<8xf32> to vector<8x1xf32>
      %126 = math.log %125 : vector<8x1xf32>
      %127 = arith.addf %114, %126 : vector<8x1xf32>
      %c0_72 = arith.constant 0 : index
      %c0_73 = arith.constant 0 : index
      %128 = vector.load %arg7[%c0_72, %c0_73] : memref<8x128xf32, #tpu.memory_space<vmem>>, vector<8x128xf32>
      %cst_74 = arith.constant dense<0.000000e+00> : vector<8xf32>
      %129 = vector.multi_reduction <add>, %128, %cst_74 [1] : vector<8x128xf32> to vector<8xf32>
      %130 = vector.shape_cast %129 : vector<8xf32> to vector<8x1xf32>
      %c0_75 = arith.constant 0 : index
      %c0_76 = arith.constant 0 : index
      %131 = vector.load %arg8[%c0_75, %c0_76] : memref<8x128xf32, #tpu.memory_space<vmem>>, vector<8x128xf32>
      %cst_77 = arith.constant dense<0.000000e+00> : vector<8xf32>
      %132 = vector.multi_reduction <add>, %131, %cst_77 [1] : vector<8x128xf32> to vector<8xf32>
      %133 = vector.shape_cast %132 : vector<8xf32> to vector<8x1xf32>
      %134 = arith.mulf %127, %130 : vector<8x1xf32>
      %135 = arith.subf %134, %133 : vector<8x1xf32>
      %c8_i32 = arith.constant 8 : i32
      %136 = arith.muli %arg0, %c8_i32 : i32
      %137 = tpu.iota {dimensions = array<i32: 0>} : vector<8x1xi32>
      %138 = vector.broadcast %136 : i32 to vector<8x1xi32>
      %139 = arith.addi %138, %137 : vector<8x1xi32>
      %c12_i32 = arith.constant 12 : i32
      %140 = vector.broadcast %c12_i32 : i32 to vector<8x1xi32>
      %141 = arith.cmpi slt, %139, %140 : vector<8x1xi32>
      %cst_78 = arith.constant 0.000000e+00 : f32
      %142 = vector.broadcast %cst_78 : f32 to vector<8x1xf32>
      %143 = arith.select %141, %135, %142 : vector<8x1xi1>, vector<8x1xf32>
      %c0_79 = arith.constant 0 : index
      %c0_80 = arith.constant 0 : index
      %144 = vector.load %arg4[%c0_79, %c0_80] : memref<8x1xf32, #tpu.memory_space<vmem>>, vector<8x1xf32>
      tpu.vector_store %arg4[%c0_79, %c0_80], %143 {strides = array<i32>} : memref<8x1xf32, #tpu.memory_space<vmem>>, vector<8x1xf32>,
    } else {
    }
    return
  }
  func.func @transform_0(%arg0: i32, %arg1: i32) -> (i32, i32) {
    %c0_i32 = arith.constant 0 : i32
    return %arg0, %arg1 : i32, i32
  }
  func.func @transform_1(%arg0: i32, %arg1: i32) -> (i32, i32) {
    %c0_i32 = arith.constant 0 : i32
    return %arg0, %arg1 : i32, i32
  }
  func.func @transform_2(%arg0: i32, %arg1: i32) -> (i32, i32) {
    %c0_i32 = arith.constant 0 : i32
    %c0_i32_0 = arith.constant 0 : i32
    return %arg0, %c0_i32 : i32, i32
  }
}

</mosaic_0001>

<bundles_post_ra>
// kernel: tpu_custom_call.1
= control target key start
LH: loop header
LB: loop body
LE: loop exit
PB: predicated region body
PF: predicated region fallthrough
CT: control target
= control target key end

     0   :  { %7 = vsyncpa [#allocation7], 0  ;;  %s935_s0 = inlined_call_operand.hbm [shape: f32[12,1000], index: 0, kind: input, shape index: {}]   ;;  %s936_s1 = inlined_call_operand.hbm [shape: f32[12,1000], index: 1, kind: input, shape index: {}]   ;;  %s937_s2 = inlined_call_operand.vmem [shape: f32[16,1], index: 2, kind: output, shape index: {}]  }
   0x1   :  { %9 = vsyncpa [#allocation7 + $0x1], 0 }
   0x2   :  { %10 = vsyncpa [#allocation9], 0 }
   0x3   :  { %12 = vsyncpa [#allocation9 + $0x1], 0  ;;  %s696_s9 = smov 0   ;;  %s698_s10 = smov 0  }
   0x4   :  { %s700_s11 = smov 0   ;;  %s702_s12 = smov 0  }
   0x5   :  { %s704_s13 = smov 0   ;;  %s706_s14 = smov 0  }
   0x6 LB: > { %s462_s15 = sadd.s32 4294967295, %s677_s14   ;;  %s30_s16 = sadd.s32 1, %s673_s13  ;;  %s677_s14 = sphi %s706_s14, %s18_s14   ;;  %s673_s13 = sphi %s704_s13, %s951_s13   ;;  %s669_s12 = sphi %s702_s12, %s950_s12   ;;  %s665_s11 = sphi %s700_s11, %s949_s11   ;;  %s661_s10 = sphi %s698_s10, %s948_s10   ;;  %s657_s9 = sphi %s696_s9, %s947_s9  }
   0x7   : > { %p32_p0 = scmp.ge.s32.totalorder %s30_s16, 2  ;;  %s39_s17 = sadd.s32 1, %s665_s11 }
   0x8   : > { %p46_p1 = scmp.ne.s32.totalorder %s665_s11, %s661_s10  ;;  %p47_p2 = scmp.eq.s32.totalorder %s677_s14, 0 }
   0x9   : > { %s953_s16 = smov (%p32_p0, %s30_s16), 0  ;;  %p52_p4 = scmp.ne.s32.totalorder %s661_s10, %s657_s9 }
   0xa   : > { %p732_p3 = por %p47_p2, %p46_p1  ;;  %s34_s19 = ssub.s32 %s673_s13, %s953_s16 }
   0xb   : > { %p53_p5 = scmp.eq.s32.totalorder %s462_s15, 0  ;;  %p37_p6 = scmp.eq.s32.totalorder %s34_s19, 0 }
   0xc   : > { %p492_p8 = scmp.lt.s32.totalorder %s677_s14, 2  ;;  %s748_s22 = sand.u32 1, %s665_s11  }
   0xd   : > { %p739_p7 = por %p53_p5, %p52_p4  ;;  %s479_s23 = sshll.u32 %s673_s13, 10 }
   0xe   : > { %s745_s21 = scalar_select %p37_p6, %s665_s11, %s39_s17  }
   0xf   : > { %s940_s20 = scalar_select %p739_p7, 1, 0 }
  0x10   : > { %s466_s24 = sshll.u32 %s748_s22, 6  ;;  %s757_s27 = scalar_lea.hbm %s935_s0, %s479_s23 }
  0x11   : > { %s134_s28 = scalar_lea.vmem [#allocation6], %s466_s24  ;;  %p763_p9 = pnand %p492_p8, %p732_p3 }
  0x12   : > { %s144_s29 = sshll.u32 %s134_s28, 4  ;;  %s131_s3 = scalar_lea.sflag [#allocation7], %s748_s22  ;;  %s767_s29 = int_to_ptr.vmem [resolvable:$true] %s144_s29 }
  0x13   : > { %s563_s4 = scalar_lea.hbm %s757_s27, 1024  ;;  %p565_p13 = pneg %p763_p9 }
  0x14   : > { %p564_p12 = scmp.ne.s32.totalorder %s757_s27, %s563_s4  ;;  %s568_s7 = scalar_lea.hbm %s935_s0, 2048 }
  0x15   : > { %p569_p2 = scmp.lt.u32.totalorder %s757_s27, %s935_s0  ;;  %p570_p3 = scmp.lt.u32.totalorder %s568_s7, %s563_s4 }
  0x16   : > { %p566_p0 = pnand %p565_p13, %p564_p12  ;;  %p572_p5 = scmp.lt.u32.totalorder %s563_s4, %s757_s27 }
  0x17   : > { %p571_p4 = por %p570_p3, %p569_p2 }
  0x18   : > { %p567_p1 = pneg %p566_p0 }
  0x19   : > { %p573_p6 = por %p572_p5, %p571_p4 }
  0x1b   : > { %p574_p8 = pnand %p573_p6, %p567_p1 }
  0x1d   : > { %577 = shalt.err (!%p574_p8)
}
  0x1e   : > { %s578_s15 = scalar_lea.vmem %s767_s29, 1024  ;;  %s679_s17 = smov [#allocation6]  }
  0x1f   : > { %p579_p12 = scmp.ne.s32.totalorder %s767_s29, %s578_s15  ;;  %s583_s18 = sshll.u32 %s679_s17, 4  ;;  %s584_s18 = int_to_ptr.vmem [resolvable:$false] %s583_s18 }
  0x20   : > { %s585_s19 = scalar_lea.vmem %s584_s18, 2048  ;;  %p586_p11 = scmp.lt.s32.totalorder %s767_s29, %s584_s18 }
  0x21   : > { %p581_p0 = pnand %p579_p12, %p565_p13  ;;  %p587_p2 = scmp.lt.s32.totalorder %s585_s19, %s578_s15 }
  0x23   : > { %p582_p10 = pneg %p581_p0  ;;  %p588_p3 = por %p587_p2, %p586_p11 }
  0x25   : > { %p589_p4 = pnand %p588_p3, %p582_p10 }
  0x27   : > { %592 = shalt.err (!%p589_p4)
}
  0x28   : > { %488 = dma.hbm_to_vmem [thread:$0]  (!%p763_p9), %s757_s27, 1024, %s767_s29, %s131_s3  }
  0x29   : > { %p942_p1 = scmp.lt.s32.totalorder %s677_s14, 3  ;;  %p943_p5 = scmp.ge.s32.totalorder %s677_s14, 1 }
  0x2a   : > { %s810_s4 = scalar_lea.hbm %s936_s1, %s479_s23  ;;  %s155_s5 = scalar_lea.vmem [#allocation8], %s466_s24 }
  0x2b   : > { %p801_p6 = pnand %p943_p5, %p942_p1  ;;  %s165_s6 = sshll.u32 %s155_s5, 4  ;;  %s166_s6 = int_to_ptr.vmem [resolvable:$true] %s165_s6 }
  0x2c   : > { %s152_s27 = scalar_lea.sflag [#allocation9], %s748_s22  ;;  %s593_s29 = scalar_lea.hbm %s810_s4, 1024 }
  0x2d   : > { %s944_s25 = scalar_select %p801_p6, 1, 0 }
  0x2e   : > { %p594_p10 = scmp.ne.s32.totalorder %s810_s4, %s593_s29  ;;  %s598_s23 = scalar_lea.hbm %s936_s1, 2048 }
  0x2f   : > { %p599_p12 = scmp.lt.u32.totalorder %s810_s4, %s936_s1  ;;  %p600_p0 = scmp.lt.u32.totalorder %s598_s23, %s593_s29 }
  0x30   : > { %p596_p11 = pnand %p594_p10, %p565_p13  ;;  %p602_p3 = scmp.lt.u32.totalorder %s593_s29, %s810_s4 }
  0x31   : > { %p601_p2 = por %p600_p0, %p599_p12 }
  0x32   : > { %p597_p8 = pneg %p596_p11 }
  0x33   : > { %p603_p4 = por %p602_p3, %p601_p2 }
  0x35   : > { %p604_p1 = pnand %p603_p4, %p597_p8 }
  0x37   : > { %607 = shalt.err (!%p604_p1)
}
  0x38   : > { %s608_s22 = scalar_lea.vmem %s166_s6, 1024  ;;  %s680_s24 = smov [#allocation8]  }
  0x39   : > { %p609_p5 = scmp.ne.s32.totalorder %s166_s6, %s608_s22  ;;  %s613_s15 = sshll.u32 %s680_s24, 4  ;;  %s614_s15 = int_to_ptr.vmem [resolvable:$false] %s613_s15 }
  0x3a   : > { %s615_s17 = scalar_lea.vmem %s614_s15, 2048  ;;  %p616_p7 = scmp.lt.s32.totalorder %s166_s6, %s614_s15 }
  0x3b   : > { %p611_p10 = pnand %p609_p5, %p565_p13  ;;  %p617_p6 = scmp.lt.s32.totalorder %s615_s17, %s608_s22 }
  0x3d   : > { %p612_p11 = pneg %p611_p10  ;;  %p618_p0 = por %p617_p6, %p616_p7 }
  0x3f   : > { %p619_p12 = pnand %p618_p0, %p612_p11 }
  0x41   : > { %622 = shalt.err (!%p619_p12)
}
  0x42   : > { %491 = dma.hbm_to_vmem [thread:$0]  (!%p763_p9), %s810_s4, 1024, %s166_s6, %s152_s27  }
  0x43   : > { %p945_p8 = scmp.ne.s32.totalorder %s944_s25, 0 }
  0x44   : > { %s176_s18 = sand.u32 (!%p945_p8), 1, %s661_s10   ;;  %p946_p13 = scmp.ne.s32.totalorder (!%p945_p8), %s940_s20, 0 }
  0x45   : > { %174 = sbr.rel (%p945_p8) target bundleno = 418 (0x1a2), region = 28  ;;  %s473_s19 = sshll.u32 (!%p945_p8), %s176_s18, 6 }
  0x46   : > { %s177_s26 = scalar_lea.sflag (!%p945_p8), [#allocation7], %s176_s18  ;;  %s180_s28 = scalar_lea.vmem (!%p945_p8), [#allocation6], %s473_s19 }
  0x4c   : > { %648 = dma.done.wait (%p946_p13), %s177_s26, 1024  }
  0x4d   : > { %650 = vsyncadd (%p946_p13), %s177_s26, 4294966272  ;;  %s186_s5 = scalar_lea.sflag [#allocation9], %s176_s18  ;;  %s841_s29 = scalar_lea.vmem [#allocation8], %s473_s19 }
  0x4e   : > { %652 = dma.done.wait (%p946_p13), %s186_s5, 1024  }
  0x4f   : > { %654 = vsyncadd (%p946_p13), %s186_s5, 4294966272  ;;  %v228_v0 = vlaneseq  ;;  %v847_v1 = vld [vmem:[%s180_s28] sm:$0xff]  ;;  %v849_v2 = vld [vmem:[%s180_s28 + $0x8] sm:$0xff]  ;;  %p216_p7 = scmp.lt.s32.totalorder %s669_s12, 1  ;;  %s476_s20 = sshll.u32 %s669_s12, 3  ;;  %vm358_vm4 = vcmask 7168  }
  0x50   : > { %v851_v3 = vld [vmem:[%s180_s28 + $0x10] sm:$0xff]  ;;  %v234_v4 = vmax.f32 %v847_v1, %v849_v2  ;;  %v855_v5 = vld [vmem:[%s180_s28 + $0x18] sm:$0xff]  ;;  %v861_v8 = vld [vmem:[%s180_s28 + $0x20] sm:$0xff] }
  0x51   : > { %v858_v6 = vand.u32 127, %v228_v0  ;;  %v864_v10 = vld [vmem:[%s180_s28 + $0x28] sm:$0xff]  ;;  %v868_v12 = vld [vmem:[%s180_s28 + $0x38] sm:$0xff]  ;;  %v870_v13 = vld [vmem:[%s180_s28 + $0x30] sm:$0xff]  ;;  %s955_s12 = smov (!%p216_p7, %s669_s12), 1 }
  0x52   : > { %v236_v7 = vmax.f32 %v234_v4, %v851_v3  ;;  %v258_v46 = vld [vmem:[%s841_s29] sm:$0xff]  ;;  %v266_v47 = vld [vmem:[%s841_s29 + $0x8] sm:$0xff]  ;;  %v274_v51 = vld [vmem:[%s841_s29 + $0x10] sm:$0xff]  ;;  %s475_s30 = sshll.u32 %s955_s12, 3 }
  0x53   : > { %vm230_vm0 = vcmp.lt.s32.totalorder %v858_v6, 104  ;;  %v272_v49 = vadd.f32 %v266_v47, %v258_v46  ;;  %v282_v52 = vld [vmem:[%s841_s29 + $0x18] sm:$0xff]  ;;  %v262_v53 = vmul.f32 %v258_v46, %v847_v1  ;;  %v270_v54 = vmul.f32 %v266_v47, %v849_v2  ;;  %v290_v59 = vld [vmem:[%s841_s29 + $0x20] sm:$0xff]  ;;  %s219_s6 = scalar_lea.vmem %s937_s2, %s475_s30 }
  0x54   : > { %v238_v9 = vmax.f32 %v236_v7, %v855_v5  ;;  %v246_v15 = vsel %vm230_vm0, %v868_v12, -inf  ;;  %v278_v57 = vmul.f32 %v274_v51, %v851_v3  ;;  %v314_v60 = vld [vmem:[%s841_s29 + $0x38] sm:$0xff]  ;;  %v286_v63 = vmul.f32 %v282_v52, %v855_v5 }
  0x55   : > { %v280_v56 = vadd.f32 %v274_v51, %v272_v49  ;;  %v273_v4 = vadd.f32 %v270_v54, %v262_v53 }
  0x56   : > { %v240_v11 = vmax.f32 %v238_v9, %v861_v8  ;;  %v298_v9 = vld [vmem:[%s841_s29 + $0x28] sm:$0xff] }
  0x57   : > { %v288_v62 = vadd.f32 %v282_v52, %v280_v56 }
  0x58   : > { %v242_v14 = vmax.f32 %v240_v11, %v864_v10 }
  0x5a   : > { %v244_v16 = vmax.f32 %v242_v14, %v870_v13  ;;  %v296_v14 = vadd.f32 %v290_v59, %v288_v62 }
  0x5c   : > { %v877_v17 = vmax.f32 %v244_v16, %v246_v15  ;;  %v306_v16 = vld [vmem:[%s841_s29 + $0x30] sm:$0xff] }
  0x5e   : > { %329 = vmax.xlane.f32.xlu0 %v877_v17  ;;  %vm249_vm1 = vcmp.eq.f32.partialorder %v877_v17, -inf }
  0x5f   : > { %v250_v18 = vsel %vm249_vm1, 0.0, %v877_v17 }
  0x60   : > { %v259_v19 = vsub.f32 %v847_v1, %v250_v18  ;;  %v251_v20 = vsub.f32 -inf, %v250_v18  ;;  %v267_v21 = vsub.f32 %v849_v2, %v250_v18  ;;  %v275_v23 = vsub.f32 %v851_v3, %v250_v18 }
  0x61   : > { %v283_v26 = vsub.f32 %v855_v5, %v250_v18  ;;  %v291_v28 = vsub.f32 %v861_v8, %v250_v18  ;;  %v299_v30 = vsub.f32 %v864_v10, %v250_v18  ;;  %v307_v32 = vsub.f32 %v870_v13, %v250_v18 }
  0x62   : > { %v260_v22 = vmul.f32 1.442695, %v259_v19  ;;  %v252_v24 = vmul.f32 1.442695, %v251_v20  ;;  %v268_v25 = vmul.f32 1.442695, %v267_v21  ;;  %v315_v34 = vsub.f32 %v246_v15, %v250_v18 }
  0x63   : > { %v276_v27 = vmul.f32 1.442695, %v275_v23  ;;  %v284_v29 = vmul.f32 1.442695, %v283_v26  ;;  %v292_v31 = vmul.f32 1.442695, %v291_v28  ;;  %v294_v2 = vmul.f32 %v290_v59, %v861_v8 }
  0x64   : > { %541 = vpow2.f32 %v260_v22  ;;  %v300_v33 = vmul.f32 1.442695, %v299_v30  ;;  %v308_v35 = vmul.f32 1.442695, %v307_v32  ;;  %v316_v38 = vmul.f32 1.442695, %v315_v34 }
  0x65   : > { %543 = vpow2.f32 %v252_v24  ;;  %v318_v1 = vsel %vm230_vm0, %v314_v60, 0.0  ;;  %v281_v15 = vadd.f32 %v278_v57, %v273_v4  ;;  %v304_v18 = vadd.f32 %v298_v9, %v296_v14 }
  0x66   : > { %545 = vpow2.f32 %v268_v25  ;;  %v302_v19 = vmul.f32 %v298_v9, %v864_v10  ;;  %v319_v5 = vmul.f32 %v318_v1, %v868_v12  ;;  %v310_v23 = vmul.f32 %v306_v16, %v870_v13 }
  0x67   : > { %547 = vpow2.f32 %v276_v27  ;;  %v289_v20 = vadd.f32 %v286_v63, %v281_v15  ;;  %v312_v22 = vadd.f32 %v306_v16, %v304_v18  ;;  %v354_v34 = vstv %s476_s20 }
  0x68   : > { %549 = vpow2.f32 %v284_v29  ;;  %v320_v27 = vsel %vm230_vm0, %v319_v5, 0.0 }
  0x69   : > { %551 = vpow2.f32 %v292_v31  ;;  %v297_v24 = vadd.f32 %v294_v2, %v289_v20  ;;  %v322_v25 = vadd.f32 %v318_v1, %v312_v22 }
  0x6a   : > { %553 = vpow2.f32 %v300_v33  ;;  %v353_v33 = vshrl.u32 %v228_v0, 7 }
  0x6b   : > { %555 = vpow2.f32 %v308_v35  ;;  %v305_v26 = vadd.f32 %v302_v19, %v297_v24  ;;  %344 = vadd.xlane.f32.xlu1 %v322_v25 }
  0x6c   : > { %557 = vpow2.f32 %v316_v38 }
  0x6d   : > { %v313_v8 = vadd.f32 %v310_v23, %v305_v26 }
  0x6e   : > { %v542_v36 = vpop.eup %541 }
  0x6f   : > { %v544_v37 = vpop.eup %543  ;;  %v323_v28 = vadd.f32 %v320_v27, %v313_v8 }
  0x70   : > { %v255_v39 = vmul.f32 0.0, %v544_v37  ;;  %v546_v40 = vpop.eup %545  ;;  %v355_v37 = vadd.s32 %v354_v34, %v353_v33 }
  0x71   : > { %v548_v42 = vpop.eup %547  ;;  %347 = vadd.xlane.f32.xlu1 %v323_v28 }
  0x72   : > { %v263_v41 = vadd.f32 %v542_v36, %v255_v39  ;;  %v550_v44 = vpop.eup %549  ;;  %vm356_vm3 = vcmp.lt.s32.totalorder %v355_v37, 12 }
  0x73   : > { %v552_v48 = vpop.eup %551 }
  0x74   : > { %v271_v43 = vadd.f32 %v546_v40, %v263_v41  ;;  %v554_v55 = vpop.eup %553 }
  0x75   : > { %v556_v61 = vpop.eup %555 }
  0x76   : > { %v279_v45 = vadd.f32 %v548_v42, %v271_v43  ;;  %v558_v11 = vpop.eup %557 }
  0x78   : > { %v287_v50 = vadd.f32 %v550_v44, %v279_v45 }
  0x7a   : > { %v295_v58 = vadd.f32 %v552_v48, %v287_v50 }
  0x7c   : > { %v303_v7 = vadd.f32 %v554_v55, %v295_v58 }
  0x7e   : > { %v311_v3 = vadd.f32 %v556_v61, %v303_v7 }
  0x80   : > { %v321_v21 = vadd.f32 %v558_v11, %v311_v3 }
  0xeb   : > { %v330_v10 = vpop.xlane.xlu0 %329 }
  0xec   : > { %vm331_vm2 = vcmp.eq.f32.partialorder %v330_v10, -inf }
  0xed   : > { %v332_v29 = vsel %vm331_vm2, 0.0, %v330_v10 }
  0xee   : > { %v333_v12 = vsub.f32 %v877_v17, %v332_v29 }
  0xf0   : > { %v334_v30 = vmul.f32 1.442695, %v333_v12 }
  0xf2   : > { %559 = vpow2.f32 %v334_v30 }
  0xf8   : > { %v345_v6 = vpop.xlane.xlu1 %344 }
  0xfc   : > { %v560_v13 = vpop.eup %559 }
  0xfd   : > { %v337_v31 = vmul.f32 %v560_v13, %v321_v21 }
  0xfe   : > { %v348_v17 = vpop.xlane.xlu1 %347 }
  0xff   : > { %338 = vadd.xlane.f32.xlu0 %v337_v31 }
 0x18c   : > { %v339_v32 = vpop.xlane.xlu0 %338 }
 0x18d   : > { %561 = vlog2.f32 %v339_v32 }
 0x197   : > { %v562_v35 = vpop.eup %561 }
 0x198   : > { %v341_v36 = vmul.f32 0.6931472, %v562_v35 }
 0x19a   : > { %v342_v38 = vadd.f32 %v341_v36, %v330_v10 }
 0x19c   : > { %v349_v39 = vmul.f32 %v345_v6, %v342_v38 }
 0x19e   : > { %v350_v40 = vsub.f32 %v349_v39, %v348_v17 }
 0x1a0   : > { %v357_v41 = vsel %vm356_vm3, %v350_v40, 0.0 }
 0x1a1   : > { %359 = vst.msk [vmem:[%s219_s6] sm:$0xff] %vm358_vm4, %v357_v41 }
 0x1a2 PF: > { %s18_s14 = sadd.s32 1, %s677_s14   ;;  %s947_s9 = smov %s661_s10 }
 0x1a3   : > { %p15_p9 = scmp.ge.s32.totalorder %s18_s14, 4   ;;  %s948_s10 = smov %s665_s11 }
 0x1a4   : > { %s949_s11 = smov %s745_s21  ;;  %s950_s12 = smov %s673_s13 }
 0x1a5   : > { %s951_s13 = smov %s953_s16  ;;  %17 = sbr.rel (!%p15_p9) target bundleno = 6 (0x6), region = 85 }
 0x1ac   :  { %379 = vsyncpa [#allocation7], 1 }
 0x1ad   :  { %381 = vsyncpa [#allocation7 + $0x1], 1 }
 0x1ae   :  { %382 = vsyncpa [#allocation9], 1 }
 0x1af   :  { %384 = vsyncpa [#allocation9 + $0x1], 1 }

</bundles_post_ra>
